<compile_context>
chip_gen: v7x
topology: tpu7x:2x2x1
jax: 0.10.0
libtpu: 0.0.40
codegen_flags: <defaults>
</compile_context>

<pallas_src>
import functools

import jax
import jax.numpy as jnp
from jax import lax
from jax.experimental import pallas as pl
from jax.experimental.pallas import tpu as pltpu


# ----------------------------------------------------------------------------
# Fused per-batch-element kernel: MHA + residual + LN1 + FFN + residual + LN2
# ----------------------------------------------------------------------------
def _layer_kernel(nhead, has_pos, src_ref, *rest):
    if has_pos:
        (pos_ref, wqkv_ref, bqkv_ref, wo_ref, bo_ref,
         g1_ref, be1_ref, g2_ref, be2_ref,
         w1_ref, b1_ref, w2_ref, b2_ref, out_ref) = rest
    else:
        (wqkv_ref, bqkv_ref, wo_ref, bo_ref,
         g1_ref, be1_ref, g2_ref, be2_ref,
         w1_ref, b1_ref, w2_ref, b2_ref, out_ref) = rest
        pos_ref = None

    S = src_ref.shape[1]
    D = src_ref.shape[2]
    dh = D // nhead
    eps = 1e-5            # nn.LayerNorm default
    neg_slope = 0.01      # F.leaky_relu default

    src = src_ref[0]                       # (S, D) f32 — this batch element
    if has_pos:
        x = src + pos_ref[0]               # q = k = v input ("graph" rows)
    else:
        x = src

    # Fused QKV projection: one (S,D) x (D,3D) MXU matmul, bf16 operands / f32 accum.
    # The 1/sqrt(dh) attention scale is already folded into the q-columns of wqkv/bqkv.
    qkv = jnp.dot(x.astype(jnp.bfloat16), wqkv_ref[...],
                  preferred_element_type=jnp.float32) + bqkv_ref[...]      # (S, 3D) f32
    qkv_bf = qkv.astype(jnp.bfloat16)       # matmul-operand precision (accum stays f32)

    # Per-head attention (static unroll over the small head count; only one (S,S) score
    # matrix is live at a time).  All-ones adjacency mask dropped as a no-op.
    head_outs = []
    for h in range(nhead):
        lo = h * dh
        q_h = qkv_bf[:, lo:lo + dh]                         # (S, dh)
        k_h = qkv_bf[:, D + lo:D + lo + dh]                 # (S, dh)
        v_h = qkv_bf[:, 2 * D + lo:2 * D + lo + dh]         # (S, dh)

        # scores = q @ k^T (contraction over dh), f32 accumulation.
        s = lax.dot_general(q_h, k_h, (((1,), (1,)), ((), ())),
                            preferred_element_type=jnp.float32)            # (S, S)
        s = s - jnp.max(s, axis=-1, keepdims=True)
        p = jnp.exp(s)
        p = p / jnp.sum(p, axis=-1, keepdims=True)          # exact softmax (no approx)

        o_h = jnp.dot(p.astype(jnp.bfloat16), v_h,
                      preferred_element_type=jnp.float32)                  # (S, dh)
        head_outs.append(o_h)

    # Head concat along lanes + one full-width (S,D) x (D,D) output projection.
    o_cat = jnp.concatenate(head_outs, axis=-1)                             # (S, D)
    attn = jnp.dot(o_cat.astype(jnp.bfloat16), wo_ref[...],
                   preferred_element_type=jnp.float32) + bo_ref[...]        # (S, D)

    # Residual 1 (dropout1 = identity in eval) + LayerNorm1.
    x1 = src + attn
    mu1 = jnp.mean(x1, axis=-1, keepdims=True)
    var1 = jnp.mean((x1 - mu1) * (x1 - mu1), axis=-1, keepdims=True)
    x1n = (x1 - mu1) * lax.rsqrt(var1 + eps) * g1_ref[...] + be1_ref[...]

    # FFN: linear1 -> leaky_relu -> (dropout = identity) -> linear2.
    hdn = jnp.dot(x1n.astype(jnp.bfloat16), w1_ref[...],
                  preferred_element_type=jnp.float32) + b1_ref[...]         # (S, Dff)
    hdn = jnp.where(hdn >= 0, hdn, neg_slope * hdn)
    ff = jnp.dot(hdn.astype(jnp.bfloat16), w2_ref[...],
                 preferred_element_type=jnp.float32) + b2_ref[...]          # (S, D)

    # Residual 2 (dropout2 = identity) + LayerNorm2.
    x2 = x1n + ff
    mu2 = jnp.mean(x2, axis=-1, keepdims=True)
    var2 = jnp.mean((x2 - mu2) * (x2 - mu2), axis=-1, keepdims=True)
    out = (x2 - mu2) * lax.rsqrt(var2 + eps) * g2_ref[...] + be2_ref[...]

    out_ref[0] = out.astype(out_ref.dtype)


# ----------------------------------------------------------------------------
# Full layer forward (forward_post, normalize_before=False, eval mode)
# ----------------------------------------------------------------------------
def graph_transformer_encoder_layer(src, params, pos=None):
    """src / pos: (S, B, D) float32 -> (S, B, D) float32 (src_mask / padding mask = None)."""
    S, B, D = src.shape
    nhead = params["nhead"]
    assert D % nhead == 0
    dh = D // nhead
    dff = params["w1"].shape[1]

    # Batch-major layout so the batch grid axis maps to contiguous (S, D) tiles:
    # one clean DMA per batch element, no strided VMEM loads / masked strided stores.
    src_b = jnp.transpose(src, (1, 0, 2))                    # (B, S, D)
    pos_b = None if pos is None else jnp.transpose(pos, (1, 0, 2))
    has_pos = pos_b is not None

    # Fold the 1/sqrt(dh) scale into the q-columns of the fused QKV projection and cast
    # matmul weights to bf16 once (halves resident VMEM + HBM traffic; f32 accumulation).
    q_scale = 1.0 / float(dh) ** 0.5
    col_scale = jnp.concatenate(
        [jnp.full((1, D), q_scale, jnp.float32),
         jnp.ones((1, 2 * D), jnp.float32)], axis=1)         # (1, 3D)
    wqkv = (params["wqkv"] * col_scale).astype(jnp.bfloat16)  # (D, 3D)
    bqkv = params["bqkv"] * col_scale                         # (1, 3D) f32
    wo = params["wo"].astype(jnp.bfloat16)                    # (D, D)
    w1 = params["w1"].astype(jnp.bfloat16)                    # (D, Dff)
    w2 = params["w2"].astype(jnp.bfloat16)                    # (Dff, D)

    tok = lambda b: (b, 0, 0)      # per-batch (1, S, D) tile
    cst = lambda b: (0, 0)         # resident weight blocks

    in_specs = [pl.BlockSpec((1, S, D), tok)]                 # src
    args = [src_b]
    if has_pos:
        in_specs.append(pl.BlockSpec((1, S, D), tok))         # pos
        args.append(pos_b)
    in_specs += [
        pl.BlockSpec((D, 3 * D), cst),    # Wqkv (bf16, q-scale folded)
        pl.BlockSpec((1, 3 * D), cst),    # bqkv
        pl.BlockSpec((D, D), cst),        # Wo (bf16)
        pl.BlockSpec((1, D), cst),        # bo
        pl.BlockSpec((1, D), cst),        # norm1 gamma
        pl.BlockSpec((1, D), cst),        # norm1 beta
        pl.BlockSpec((1, D), cst),        # norm2 gamma
        pl.BlockSpec((1, D), cst),        # norm2 beta
        pl.BlockSpec((D, dff), cst),      # linear1 W (bf16)
        pl.BlockSpec((1, dff), cst),      # linear1 b
        pl.BlockSpec((dff, D), cst),      # linear2 W (bf16)
        pl.BlockSpec((1, D), cst),        # linear2 b
    ]
    args += [wqkv, bqkv, wo, params["bo"],
             params["g1"], params["be1"], params["g2"], params["be2"],
             w1, params["b1"], w2, params["b2"]]

    kern = functools.partial(_layer_kernel, nhead, has_pos)
    out_b = pl.pallas_call(
        kern,
        out_shape=jax.ShapeDtypeStruct((B, S, D), jnp.float32),
        grid_spec=pltpu.PrefetchScalarGridSpec(
            num_scalar_prefetch=0,
            grid=(B,),
            in_specs=in_specs,
            out_specs=pl.BlockSpec((1, S, D), tok),
        ),
        # Batch elements are independent -> v7x's 2 TensorCores split the batch axis.
        compiler_params=pltpu.CompilerParams(dimension_semantics=("parallel",)),
    )(*args)

    return jnp.transpose(out_b, (1, 0, 2))                    # back to (S, B, D)


# ----------------------------------------------------------------------------
# Deterministic parameter init + demo
# ----------------------------------------------------------------------------
def make_params(key, d_model, nhead, dim_feedforward):
    ks = jax.random.split(key, 8)
    s = 0.05
    return {
        "nhead": nhead,
        # fused in-projection (Wq | Wk | Wv), stored (in=D, out=3D)
        "wqkv": s * jax.random.normal(ks[0], (d_model, 3 * d_model), jnp.float32),
        "bqkv": jnp.zeros((1, 3 * d_model), jnp.float32),
        "wo": s * jax.random.normal(ks[1], (d_model, d_model), jnp.float32),
        "bo": jnp.zeros((1, d_model), jnp.float32),
        "w1": s * jax.random.normal(ks[2], (d_model, dim_feedforward), jnp.float32),
        "b1": s * jax.random.normal(ks[3], (1, dim_feedforward), jnp.float32),
        "w2": s * jax.random.normal(ks[4], (dim_feedforward, d_model), jnp.float32),
        "b2": s * jax.random.normal(ks[5], (1, d_model), jnp.float32),
        "g1": jnp.ones((1, d_model), jnp.float32),
        "be1": jnp.zeros((1, d_model), jnp.float32),
        "g2": jnp.ones((1, d_model), jnp.float32),
        "be2": jnp.zeros((1, d_model), jnp.float32),
    }


if __name__ == "__main__":
    S, B, D, NHEAD, DFF = 8, 2, 32, 4, 64   # seq, batch, d_model, heads, ffn

    key = jax.random.PRNGKey(0)
    k_src, k_pos, k_par = jax.random.split(key, 3)
    src = jax.random.normal(k_src, (S, B, D), jnp.float32)
    pos = jax.random.normal(k_pos, (S, B, D), jnp.float32)
    params = make_params(k_par, D, NHEAD, DFF)

    out = graph_transformer_encoder_layer(src, params, pos=pos)
    out = jax.block_until_ready(out)
    assert out.shape == (S, B, D) and out.dtype == jnp.float32
    assert bool(jnp.all(jnp.isfinite(out)))
    print("KERNEL_OK")
</pallas_src>

<mosaic_0001>
module attributes {stable_mosaic.version = 11 : i64} {
  func.func @_layer_kernel(%arg0: i32, %arg1: memref<1x8x32xf32, #tpu.memory_space<vmem>>, %arg2: memref<1x8x32xf32, #tpu.memory_space<vmem>>, %arg3: memref<32x96xbf16, #tpu.memory_space<vmem>>, %arg4: memref<1x96xf32, #tpu.memory_space<vmem>>, %arg5: memref<32x32xbf16, #tpu.memory_space<vmem>>, %arg6: memref<1x32xf32, #tpu.memory_space<vmem>>, %arg7: memref<1x32xf32, #tpu.memory_space<vmem>>, %arg8: memref<1x32xf32, #tpu.memory_space<vmem>>, %arg9: memref<1x32xf32, #tpu.memory_space<vmem>>, %arg10: memref<1x32xf32, #tpu.memory_space<vmem>>, %arg11: memref<32x64xbf16, #tpu.memory_space<vmem>>, %arg12: memref<1x64xf32, #tpu.memory_space<vmem>>, %arg13: memref<64x32xbf16, #tpu.memory_space<vmem>>, %arg14: memref<1x32xf32, #tpu.memory_space<vmem>>, %arg15: memref<1x8x32xf32, #tpu.memory_space<vmem>>) attributes {dimension_semantics = [#tpu.dimension_semantics<parallel>], iteration_bounds = array<i64: 2>, scalar_prefetch = 0 : i64, scratch_operands = 0 : i64, tpu.core_type = #tpu.core_type<tc>, window_params = [{transform_indices = @transform_0, window_bounds = array<i64: 1, 8, 32>}, {transform_indices = @transform_1, window_bounds = array<i64: 1, 8, 32>}, {pipeline_mode = #tpu.pipeline_mode<synchronous>, transform_indices = @transform_2, window_bounds = array<i64: 32, 96>}, {pipeline_mode = #tpu.pipeline_mode<synchronous>, transform_indices = @transform_3, window_bounds = array<i64: 1, 96>}, {pipeline_mode = #tpu.pipeline_mode<synchronous>, transform_indices = @transform_4, window_bounds = array<i64: 32, 32>}, {pipeline_mode = #tpu.pipeline_mode<synchronous>, transform_indices = @transform_5, window_bounds = array<i64: 1, 32>}, {pipeline_mode = #tpu.pipeline_mode<synchronous>, transform_indices = @transform_6, window_bounds = array<i64: 1, 32>}, {pipeline_mode = #tpu.pipeline_mode<synchronous>, transform_indices = @transform_7, window_bounds = array<i64: 1, 32>}, {pipeline_mode = #tpu.pipeline_mode<synchronous>, transform_indices = @transform_8, window_bounds = array<i64: 1, 32>}, {pipeline_mode = #tpu.pipeline_mode<synchronous>, transform_indices = @transform_9, window_bounds = array<i64: 1, 32>}, {pipeline_mode = #tpu.pipeline_mode<synchronous>, transform_indices = @transform_10, window_bounds = array<i64: 32, 64>}, {pipeline_mode = #tpu.pipeline_mode<synchronous>, transform_indices = @transform_11, window_bounds = array<i64: 1, 64>}, {pipeline_mode = #tpu.pipeline_mode<synchronous>, transform_indices = @transform_12, window_bounds = array<i64: 64, 32>}, {pipeline_mode = #tpu.pipeline_mode<synchronous>, transform_indices = @transform_13, window_bounds = array<i64: 1, 32>}, {transform_indices = @transform_14, window_bounds = array<i64: 1, 8, 32>}]} {
    %c0 = arith.constant 0 : index
    %c0_0 = arith.constant 0 : index
    %c0_1 = arith.constant 0 : index
    %0 = vector.load %arg1[%c0, %c0_0, %c0_1] : memref<1x8x32xf32, #tpu.memory_space<vmem>>, vector<1x8x32xf32>
    %1 = vector.shape_cast %0 : vector<1x8x32xf32> to vector<8x32xf32>
    %c0_2 = arith.constant 0 : index
    %c0_3 = arith.constant 0 : index
    %c0_4 = arith.constant 0 : index
    %2 = vector.load %arg2[%c0_2, %c0_3, %c0_4] : memref<1x8x32xf32, #tpu.memory_space<vmem>>, vector<1x8x32xf32>
    %3 = vector.shape_cast %2 : vector<1x8x32xf32> to vector<8x32xf32>
    %4 = arith.addf %1, %3 : vector<8x32xf32>
    %5 = arith.truncf %4 : vector<8x32xf32> to vector<8x32xbf16>
    %c0_5 = arith.constant 0 : index
    %c0_6 = arith.constant 0 : index
    %6 = vector.load %arg3[%c0_5, %c0_6] : memref<32x96xbf16, #tpu.memory_space<vmem>>, vector<32x96xbf16>
    %cst = arith.constant dense<0.000000e+00> : vector<8x96xf32>
    %7 = tpu.matmul %5, %6, %cst {dimension_numbers = #tpu.dot_dimension_numbers<[1], [0], [0], [1], [0, 0, 1, 1], [], []>} : vector<8x32xbf16>, vector<32x96xbf16>, vector<8x96xf32> -> vector<8x96xf32>
    %c0_7 = arith.constant 0 : index
    %c0_8 = arith.constant 0 : index
    %8 = vector.load %arg4[%c0_7, %c0_8] : memref<1x96xf32, #tpu.memory_space<vmem>>, vector<1x96xf32>
    %9 = vector.broadcast %8 : vector<1x96xf32> to vector<8x96xf32>
    %10 = arith.addf %7, %9 : vector<8x96xf32>
    %11 = arith.truncf %10 : vector<8x96xf32> to vector<8x96xbf16>
    %12 = vector.extract_strided_slice %11 {offsets = [0, 0], sizes = [8, 8], strides = [1, 1]} : vector<8x96xbf16> to vector<8x8xbf16>
    %13 = vector.extract_strided_slice %11 {offsets = [0, 32], sizes = [8, 8], strides = [1, 1]} : vector<8x96xbf16> to vector<8x8xbf16>
    %14 = vector.extract_strided_slice %11 {offsets = [0, 64], sizes = [8, 8], strides = [1, 1]} : vector<8x96xbf16> to vector<8x8xbf16>
    %cst_9 = arith.constant dense<0.000000e+00> : vector<8x8xf32>
    %15 = tpu.matmul %12, %13, %cst_9 {dimension_numbers = #tpu.dot_dimension_numbers<[1], [1], [0], [0], [0, 0, 1, 0], [], []>} : vector<8x8xbf16>, vector<8x8xbf16>, vector<8x8xf32> -> vector<8x8xf32>
    %cst_10 = arith.constant dense<0xFF800000> : vector<8xf32>
    %16 = vector.multi_reduction <maximumf>, %15, %cst_10 [1] : vector<8x8xf32> to vector<8xf32>
    %17 = vector.shape_cast %16 : vector<8xf32> to vector<8x1xf32>
    %18 = vector.broadcast %17 : vector<8x1xf32> to vector<8x8xf32>
    %19 = arith.subf %15, %18 : vector<8x8xf32>
    %20 = math.exp %19 : vector<8x8xf32>
    %cst_11 = arith.constant dense<0.000000e+00> : vector<8xf32>
    %21 = vector.multi_reduction <add>, %20, %cst_11 [1] : vector<8x8xf32> to vector<8xf32>
    %22 = vector.shape_cast %21 : vector<8xf32> to vector<8x1xf32>
    %23 = vector.broadcast %22 : vector<8x1xf32> to vector<8x8xf32>
    %24 = arith.divf %20, %23 : vector<8x8xf32>
    %25 = arith.truncf %24 : vector<8x8xf32> to vector<8x8xbf16>
    %cst_12 = arith.constant dense<0.000000e+00> : vector<8x8xf32>
    %26 = tpu.matmul %25, %14, %cst_12 {dimension_numbers = #tpu.dot_dimension_numbers<[1], [0], [0], [1], [0, 0, 1, 1], [], []>} : vector<8x8xbf16>, vector<8x8xbf16>, vector<8x8xf32> -> vector<8x8xf32>
    %27 = vector.extract_strided_slice %11 {offsets = [0, 8], sizes = [8, 8], strides = [1, 1]} : vector<8x96xbf16> to vector<8x8xbf16>
    %28 = vector.extract_strided_slice %11 {offsets = [0, 40], sizes = [8, 8], strides = [1, 1]} : vector<8x96xbf16> to vector<8x8xbf16>
    %29 = vector.extract_strided_slice %11 {offsets = [0, 72], sizes = [8, 8], strides = [1, 1]} : vector<8x96xbf16> to vector<8x8xbf16>
    %cst_13 = arith.constant dense<0.000000e+00> : vector<8x8xf32>
    %30 = tpu.matmul %27, %28, %cst_13 {dimension_numbers = #tpu.dot_dimension_numbers<[1], [1], [0], [0], [0, 0, 1, 0], [], []>} : vector<8x8xbf16>, vector<8x8xbf16>, vector<8x8xf32> -> vector<8x8xf32>
    %cst_14 = arith.constant dense<0xFF800000> : vector<8xf32>
    %31 = vector.multi_reduction <maximumf>, %30, %cst_14 [1] : vector<8x8xf32> to vector<8xf32>
    %32 = vector.shape_cast %31 : vector<8xf32> to vector<8x1xf32>
    %33 = vector.broadcast %32 : vector<8x1xf32> to vector<8x8xf32>
    %34 = arith.subf %30, %33 : vector<8x8xf32>
    %35 = math.exp %34 : vector<8x8xf32>
    %cst_15 = arith.constant dense<0.000000e+00> : vector<8xf32>
    %36 = vector.multi_reduction <add>, %35, %cst_15 [1] : vector<8x8xf32> to vector<8xf32>
    %37 = vector.shape_cast %36 : vector<8xf32> to vector<8x1xf32>
    %38 = vector.broadcast %37 : vector<8x1xf32> to vector<8x8xf32>
    %39 = arith.divf %35, %38 : vector<8x8xf32>
    %40 = arith.truncf %39 : vector<8x8xf32> to vector<8x8xbf16>
    %cst_16 = arith.constant dense<0.000000e+00> : vector<8x8xf32>
    %41 = tpu.matmul %40, %29, %cst_16 {dimension_numbers = #tpu.dot_dimension_numbers<[1], [0], [0], [1], [0, 0, 1, 1], [], []>} : vector<8x8xbf16>, vector<8x8xbf16>, vector<8x8xf32> -> vector<8x8xf32>
    %42 = vector.extract_strided_slice %11 {offsets = [0, 16], sizes = [8, 8], strides = [1, 1]} : vector<8x96xbf16> to vector<8x8xbf16>
    %43 = vector.extract_strided_slice %11 {offsets = [0, 48], sizes = [8, 8], strides = [1, 1]} : vector<8x96xbf16> to vector<8x8xbf16>
    %44 = vector.extract_strided_slice %11 {offsets = [0, 80], sizes = [8, 8], strides = [1, 1]} : vector<8x96xbf16> to vector<8x8xbf16>
    %cst_17 = arith.constant dense<0.000000e+00> : vector<8x8xf32>
    %45 = tpu.matmul %42, %43, %cst_17 {dimension_numbers = #tpu.dot_dimension_numbers<[1], [1], [0], [0], [0, 0, 1, 0], [], []>} : vector<8x8xbf16>, vector<8x8xbf16>, vector<8x8xf32> -> vector<8x8xf32>
    %cst_18 = arith.constant dense<0xFF800000> : vector<8xf32>
    %46 = vector.multi_reduction <maximumf>, %45, %cst_18 [1] : vector<8x8xf32> to vector<8xf32>
    %47 = vector.shape_cast %46 : vector<8xf32> to vector<8x1xf32>
    %48 = vector.broadcast %47 : vector<8x1xf32> to vector<8x8xf32>
    %49 = arith.subf %45, %48 : vector<8x8xf32>
    %50 = math.exp %49 : vector<8x8xf32>
    %cst_19 = arith.constant dense<0.000000e+00> : vector<8xf32>
    %51 = vector.multi_reduction <add>, %50, %cst_19 [1] : vector<8x8xf32> to vector<8xf32>
    %52 = vector.shape_cast %51 : vector<8xf32> to vector<8x1xf32>
    %53 = vector.broadcast %52 : vector<8x1xf32> to vector<8x8xf32>
    %54 = arith.divf %50, %53 : vector<8x8xf32>
    %55 = arith.truncf %54 : vector<8x8xf32> to vector<8x8xbf16>
    %cst_20 = arith.constant dense<0.000000e+00> : vector<8x8xf32>
    %56 = tpu.matmul %55, %44, %cst_20 {dimension_numbers = #tpu.dot_dimension_numbers<[1], [0], [0], [1], [0, 0, 1, 1], [], []>} : vector<8x8xbf16>, vector<8x8xbf16>, vector<8x8xf32> -> vector<8x8xf32>
    %57 = vector.extract_strided_slice %11 {offsets = [0, 24], sizes = [8, 8], strides = [1, 1]} : vector<8x96xbf16> to vector<8x8xbf16>
    %58 = vector.extract_strided_slice %11 {offsets = [0, 56], sizes = [8, 8], strides = [1, 1]} : vector<8x96xbf16> to vector<8x8xbf16>
    %59 = vector.extract_strided_slice %11 {offsets = [0, 88], sizes = [8, 8], strides = [1, 1]} : vector<8x96xbf16> to vector<8x8xbf16>
    %cst_21 = arith.constant dense<0.000000e+00> : vector<8x8xf32>
    %60 = tpu.matmul %57, %58, %cst_21 {dimension_numbers = #tpu.dot_dimension_numbers<[1], [1], [0], [0], [0, 0, 1, 0], [], []>} : vector<8x8xbf16>, vector<8x8xbf16>, vector<8x8xf32> -> vector<8x8xf32>
    %cst_22 = arith.constant dense<0xFF800000> : vector<8xf32>
    %61 = vector.multi_reduction <maximumf>, %60, %cst_22 [1] : vector<8x8xf32> to vector<8xf32>
    %62 = vector.shape_cast %61 : vector<8xf32> to vector<8x1xf32>
    %63 = vector.broadcast %62 : vector<8x1xf32> to vector<8x8xf32>
    %64 = arith.subf %60, %63 : vector<8x8xf32>
    %65 = math.exp %64 : vector<8x8xf32>
    %cst_23 = arith.constant dense<0.000000e+00> : vector<8xf32>
    %66 = vector.multi_reduction <add>, %65, %cst_23 [1] : vector<8x8xf32> to vector<8xf32>
    %67 = vector.shape_cast %66 : vector<8xf32> to vector<8x1xf32>
    %68 = vector.broadcast %67 : vector<8x1xf32> to vector<8x8xf32>
    %69 = arith.divf %65, %68 : vector<8x8xf32>
    %70 = arith.truncf %69 : vector<8x8xf32> to vector<8x8xbf16>
    %cst_24 = arith.constant dense<0.000000e+00> : vector<8x8xf32>
    %71 = tpu.matmul %70, %59, %cst_24 {dimension_numbers = #tpu.dot_dimension_numbers<[1], [0], [0], [1], [0, 0, 1, 1], [], []>} : vector<8x8xbf16>, vector<8x8xbf16>, vector<8x8xf32> -> vector<8x8xf32>
    %72 = tpu.concatenate %26, %41, %56, %71 in 1 : vector<8x8xf32>, vector<8x8xf32>, vector<8x8xf32>, vector<8x8xf32> -> vector<8x32xf32>
    %73 = arith.truncf %72 : vector<8x32xf32> to vector<8x32xbf16>
    %c0_25 = arith.constant 0 : index
    %c0_26 = arith.constant 0 : index
    %74 = vector.load %arg5[%c0_25, %c0_26] : memref<32x32xbf16, #tpu.memory_space<vmem>>, vector<32x32xbf16>
    %cst_27 = arith.constant dense<0.000000e+00> : vector<8x32xf32>
    %75 = tpu.matmul %73, %74, %cst_27 {dimension_numbers = #tpu.dot_dimension_numbers<[1], [0], [0], [1], [0, 0, 1, 1], [], []>} : vector<8x32xbf16>, vector<32x32xbf16>, vector<8x32xf32> -> vector<8x32xf32>
    %c0_28 = arith.constant 0 : index
    %c0_29 = arith.constant 0 : index
    %76 = vector.load %arg6[%c0_28, %c0_29] : memref<1x32xf32, #tpu.memory_space<vmem>>, vector<1x32xf32>
    %77 = vector.broadcast %76 : vector<1x32xf32> to vector<8x32xf32>
    %78 = arith.addf %75, %77 : vector<8x32xf32>
    %79 = arith.addf %1, %78 : vector<8x32xf32>
    %cst_30 = arith.constant dense<0.000000e+00> : vector<8xf32>
    %80 = vector.multi_reduction <add>, %79, %cst_30 [1] : vector<8x32xf32> to vector<8xf32>
    %81 = vector.shape_cast %80 : vector<8xf32> to vector<8x1xf32>
    %cst_31 = arith.constant 3.200000e+01 : f32
    %82 = vector.broadcast %cst_31 : f32 to vector<8x1xf32>
    %83 = arith.divf %81, %82 : vector<8x1xf32>
    %84 = vector.broadcast %83 : vector<8x1xf32> to vector<8x32xf32>
    %85 = arith.subf %79, %84 : vector<8x32xf32>
    %86 = vector.broadcast %83 : vector<8x1xf32> to vector<8x32xf32>
    %87 = arith.subf %79, %86 : vector<8x32xf32>
    %88 = arith.mulf %85, %87 : vector<8x32xf32>
    %cst_32 = arith.constant dense<0.000000e+00> : vector<8xf32>
    %89 = vector.multi_reduction <add>, %88, %cst_32 [1] : vector<8x32xf32> to vector<8xf32>
    %90 = vector.shape_cast %89 : vector<8xf32> to vector<8x1xf32>
    %cst_33 = arith.constant 3.200000e+01 : f32
    %91 = vector.broadcast %cst_33 : f32 to vector<8x1xf32>
    %92 = arith.divf %90, %91 : vector<8x1xf32>
    %93 = vector.broadcast %83 : vector<8x1xf32> to vector<8x32xf32>
    %94 = arith.subf %79, %93 : vector<8x32xf32>
    %cst_34 = arith.constant 9.99999974E-6 : f32
    %95 = vector.broadcast %cst_34 : f32 to vector<8x1xf32>
    %96 = arith.addf %92, %95 : vector<8x1xf32>
    %97 = math.rsqrt %96 : vector<8x1xf32>
    %98 = vector.broadcast %97 : vector<8x1xf32> to vector<8x32xf32>
    %99 = arith.mulf %94, %98 : vector<8x32xf32>
    %c0_35 = arith.constant 0 : index
    %c0_36 = arith.constant 0 : index
    %100 = vector.load %arg7[%c0_35, %c0_36] : memref<1x32xf32, #tpu.memory_space<vmem>>, vector<1x32xf32>
    %101 = vector.broadcast %100 : vector<1x32xf32> to vector<8x32xf32>
    %102 = arith.mulf %99, %101 : vector<8x32xf32>
    %c0_37 = arith.constant 0 : index
    %c0_38 = arith.constant 0 : index
    %103 = vector.load %arg8[%c0_37, %c0_38] : memref<1x32xf32, #tpu.memory_space<vmem>>, vector<1x32xf32>
    %104 = vector.broadcast %103 : vector<1x32xf32> to vector<8x32xf32>
    %105 = arith.addf %102, %104 : vector<8x32xf32>
    %106 = arith.truncf %105 : vector<8x32xf32> to vector<8x32xbf16>
    %c0_39 = arith.constant 0 : index
    %c0_40 = arith.constant 0 : index
    %107 = vector.load %arg11[%c0_39, %c0_40] : memref<32x64xbf16, #tpu.memory_space<vmem>>, vector<32x64xbf16>
    %cst_41 = arith.constant dense<0.000000e+00> : vector<8x64xf32>
    %108 = tpu.matmul %106, %107, %cst_41 {dimension_numbers = #tpu.dot_dimension_numbers<[1], [0], [0], [1], [0, 0, 1, 1], [], []>} : vector<8x32xbf16>, vector<32x64xbf16>, vector<8x64xf32> -> vector<8x64xf32>
    %c0_42 = arith.constant 0 : index
    %c0_43 = arith.constant 0 : index
    %109 = vector.load %arg12[%c0_42, %c0_43] : memref<1x64xf32, #tpu.memory_space<vmem>>, vector<1x64xf32>
    %110 = vector.broadcast %109 : vector<1x64xf32> to vector<8x64xf32>
    %111 = arith.addf %108, %110 : vector<8x64xf32>
    %cst_44 = arith.constant 0.000000e+00 : f32
    %112 = vector.broadcast %cst_44 : f32 to vector<8x64xf32>
    %113 = arith.cmpf oge, %111, %112 : vector<8x64xf32>
    %cst_45 = arith.constant 0.00999999977 : f32
    %114 = vector.broadcast %cst_45 : f32 to vector<8x64xf32>
    %115 = arith.mulf %114, %111 : vector<8x64xf32>
    %116 = arith.select %113, %111, %115 : vector<8x64xi1>, vector<8x64xf32>
    %117 = arith.truncf %116 : vector<8x64xf32> to vector<8x64xbf16>
    %c0_46 = arith.constant 0 : index
    %c0_47 = arith.constant 0 : index
    %118 = vector.load %arg13[%c0_46, %c0_47] : memref<64x32xbf16, #tpu.memory_space<vmem>>, vector<64x32xbf16>
    %cst_48 = arith.constant dense<0.000000e+00> : vector<8x32xf32>
    %119 = tpu.matmul %117, %118, %cst_48 {dimension_numbers = #tpu.dot_dimension_numbers<[1], [0], [0], [1], [0, 0, 1, 1], [], []>} : vector<8x64xbf16>, vector<64x32xbf16>, vector<8x32xf32> -> vector<8x32xf32>
    %c0_49 = arith.constant 0 : index
    %c0_50 = arith.constant 0 : index
    %120 = vector.load %arg14[%c0_49, %c0_50] : memref<1x32xf32, #tpu.memory_space<vmem>>, vector<1x32xf32>
    %121 = vector.broadcast %120 : vector<1x32xf32> to vector<8x32xf32>
    %122 = arith.addf %119, %121 : vector<8x32xf32>
    %123 = arith.addf %105, %122 : vector<8x32xf32>
    %cst_51 = arith.constant dense<0.000000e+00> : vector<8xf32>
    %124 = vector.multi_reduction <add>, %123, %cst_51 [1] : vector<8x32xf32> to vector<8xf32>
    %125 = vector.shape_cast %124 : vector<8xf32> to vector<8x1xf32>
    %cst_52 = arith.constant 3.200000e+01 : f32
    %126 = vector.broadcast %cst_52 : f32 to vector<8x1xf32>
    %127 = arith.divf %125, %126 : vector<8x1xf32>
    %128 = vector.broadcast %127 : vector<8x1xf32> to vector<8x32xf32>
    %129 = arith.subf %123, %128 : vector<8x32xf32>
    %130 = vector.broadcast %127 : vector<8x1xf32> to vector<8x32xf32>
    %131 = arith.subf %123, %130 : vector<8x32xf32>
    %132 = arith.mulf %129, %131 : vector<8x32xf32>
    %cst_53 = arith.constant dense<0.000000e+00> : vector<8xf32>
    %133 = vector.multi_reduction <add>, %132, %cst_53 [1] : vector<8x32xf32> to vector<8xf32>
    %134 = vector.shape_cast %133 : vector<8xf32> to vector<8x1xf32>
    %cst_54 = arith.constant 3.200000e+01 : f32
    %135 = vector.broadcast %cst_54 : f32 to vector<8x1xf32>
    %136 = arith.divf %134, %135 : vector<8x1xf32>
    %137 = vector.broadcast %127 : vector<8x1xf32> to vector<8x32xf32>
    %138 = arith.subf %123, %137 : vector<8x32xf32>
    %cst_55 = arith.constant 9.99999974E-6 : f32
    %139 = vector.broadcast %cst_55 : f32 to vector<8x1xf32>
    %140 = arith.addf %136, %139 : vector<8x1xf32>
    %141 = math.rsqrt %140 : vector<8x1xf32>
    %142 = vector.broadcast %141 : vector<8x1xf32> to vector<8x32xf32>
    %143 = arith.mulf %138, %142 : vector<8x32xf32>
    %c0_56 = arith.constant 0 : index
    %c0_57 = arith.constant 0 : index
    %144 = vector.load %arg9[%c0_56, %c0_57] : memref<1x32xf32, #tpu.memory_space<vmem>>, vector<1x32xf32>
    %145 = vector.broadcast %144 : vector<1x32xf32> to vector<8x32xf32>
    %146 = arith.mulf %143, %145 : vector<8x32xf32>
    %c0_58 = arith.constant 0 : index
    %c0_59 = arith.constant 0 : index
    %147 = vector.load %arg10[%c0_58, %c0_59] : memref<1x32xf32, #tpu.memory_space<vmem>>, vector<1x32xf32>
    %148 = vector.broadcast %147 : vector<1x32xf32> to vector<8x32xf32>
    %149 = arith.addf %146, %148 : vector<8x32xf32>
    %c0_60 = arith.constant 0 : index
    %c0_61 = arith.constant 0 : index
    %c0_62 = arith.constant 0 : index
    %150 = vector.load %arg15[%c0_60, %c0_61, %c0_62] : memref<1x8x32xf32, #tpu.memory_space<vmem>>, vector<1x8x32xf32>
    %151 = vector.shape_cast %150 : vector<1x8x32xf32> to vector<8x32xf32>
    %152 = vector.shape_cast %149 : vector<8x32xf32> to vector<1x8x32xf32>
    tpu.vector_store %arg15[%c0_60, %c0_61, %c0_62], %152 {strides = array<i32>} : memref<1x8x32xf32, #tpu.memory_space<vmem>>, vector<1x8x32xf32>,
    return
  }
  func.func @transform_0(%arg0: i32) -> (i32, i32, i32) {
    %c0_i32 = arith.constant 0 : i32
    %c0_i32_0 = arith.constant 0 : i32
    %c0_i32_1 = arith.constant 0 : i32
    return %arg0, %c0_i32, %c0_i32_0 : i32, i32, i32
  }
  func.func @transform_1(%arg0: i32) -> (i32, i32, i32) {
    %c0_i32 = arith.constant 0 : i32
    %c0_i32_0 = arith.constant 0 : i32
    %c0_i32_1 = arith.constant 0 : i32
    return %arg0, %c0_i32, %c0_i32_0 : i32, i32, i32
  }
  func.func @transform_2(%arg0: i32) -> (i32, i32) {
    %c0_i32 = arith.constant 0 : i32
    %c0_i32_0 = arith.constant 0 : i32
    %c0_i32_1 = arith.constant 0 : i32
    return %c0_i32, %c0_i32_0 : i32, i32
  }
  func.func @transform_3(%arg0: i32) -> (i32, i32) {
    %c0_i32 = arith.constant 0 : i32
    %c0_i32_0 = arith.constant 0 : i32
    %c0_i32_1 = arith.constant 0 : i32
    return %c0_i32, %c0_i32_0 : i32, i32
  }
  func.func @transform_4(%arg0: i32) -> (i32, i32) {
    %c0_i32 = arith.constant 0 : i32
    %c0_i32_0 = arith.constant 0 : i32
    %c0_i32_1 = arith.constant 0 : i32
    return %c0_i32, %c0_i32_0 : i32, i32
  }
  func.func @transform_5(%arg0: i32) -> (i32, i32) {
    %c0_i32 = arith.constant 0 : i32
    %c0_i32_0 = arith.constant 0 : i32
    %c0_i32_1 = arith.constant 0 : i32
    return %c0_i32, %c0_i32_0 : i32, i32
  }
  func.func @transform_6(%arg0: i32) -> (i32, i32) {
    %c0_i32 = arith.constant 0 : i32
    %c0_i32_0 = arith.constant 0 : i32
    %c0_i32_1 = arith.constant 0 : i32
    return %c0_i32, %c0_i32_0 : i32, i32
  }
  func.func @transform_7(%arg0: i32) -> (i32, i32) {
    %c0_i32 = arith.constant 0 : i32
    %c0_i32_0 = arith.constant 0 : i32
    %c0_i32_1 = arith.constant 0 : i32
    return %c0_i32, %c0_i32_0 : i32, i32
  }
  func.func @transform_8(%arg0: i32) -> (i32, i32) {
    %c0_i32 = arith.constant 0 : i32
    %c0_i32_0 = arith.constant 0 : i32
    %c0_i32_1 = arith.constant 0 : i32
    return %c0_i32, %c0_i32_0 : i32, i32
  }
  func.func @transform_9(%arg0: i32) -> (i32, i32) {
    %c0_i32 = arith.constant 0 : i32
    %c0_i32_0 = arith.constant 0 : i32
    %c0_i32_1 = arith.constant 0 : i32
    return %c0_i32, %c0_i32_0 : i32, i32
  }
  func.func @transform_10(%arg0: i32) -> (i32, i32) {
    %c0_i32 = arith.constant 0 : i32
    %c0_i32_0 = arith.constant 0 : i32
    %c0_i32_1 = arith.constant 0 : i32
    return %c0_i32, %c0_i32_0 : i32, i32
  }
  func.func @transform_11(%arg0: i32) -> (i32, i32) {
    %c0_i32 = arith.constant 0 : i32
    %c0_i32_0 = arith.constant 0 : i32
    %c0_i32_1 = arith.constant 0 : i32
    return %c0_i32, %c0_i32_0 : i32, i32
  }
  func.func @transform_12(%arg0: i32) -> (i32, i32) {
    %c0_i32 = arith.constant 0 : i32
    %c0_i32_0 = arith.constant 0 : i32
    %c0_i32_1 = arith.constant 0 : i32
    return %c0_i32, %c0_i32_0 : i32, i32
  }
  func.func @transform_13(%arg0: i32) -> (i32, i32) {
    %c0_i32 = arith.constant 0 : i32
    %c0_i32_0 = arith.constant 0 : i32
    %c0_i32_1 = arith.constant 0 : i32
    return %c0_i32, %c0_i32_0 : i32, i32
  }
  func.func @transform_14(%arg0: i32) -> (i32, i32, i32) {
    %c0_i32 = arith.constant 0 : i32
    %c0_i32_0 = arith.constant 0 : i32
    %c0_i32_1 = arith.constant 0 : i32
    return %arg0, %c0_i32, %c0_i32_0 : i32, i32, i32
  }
}

</mosaic_0001>

<bundles_post_ra>
// kernel: tpu_custom_call.1
= control target key start
LH: loop header
LB: loop body
LE: loop exit
PB: predicated region body
PF: predicated region fallthrough
CT: control target
= control target key end

     0   :  { %s2482_s0 = inlined_call_operand.vmem [shape: f32[2,8,32], index: 0, kind: input, shape index: {}]   ;;  %s2483_s1 = inlined_call_operand.vmem [shape: f32[2,8,32], index: 1, kind: input, shape index: {}]   ;;  %s2484_s2 = inlined_call_operand.vmem [shape: bf16[32,96], index: 2, kind: input, shape index: {}]   ;;  %s2485_s3 = inlined_call_operand.vmem [shape: f32[1,96], index: 3, kind: input, shape index: {}]   ;;  %s2486_s4 = inlined_call_operand.hbm [shape: bf16[32,32], index: 4, kind: input, shape index: {}]   ;;  %s2487_s5 = inlined_call_operand.vmem [shape: f32[1,32], index: 5, kind: input, shape index: {}]   ;;  %s2488_s6 = inlined_call_operand.hbm [shape: f32[1,32], index: 6, kind: input, shape index: {}]   ;;  %s2489_s7 = inlined_call_operand.hbm [shape: f32[1,32], index: 7, kind: input, shape index: {}]   ;;  %s2490_s8 = inlined_call_operand.hbm [shape: f32[1,32], index: 8, kind: input, shape index: {}]   ;;  %s2491_s9 = inlined_call_operand.hbm [shape: f32[1,32], index: 9, kind: input, shape index: {}]   ;;  %s2492_s10 = inlined_call_operand.vmem [shape: bf16[32,64], index: 10, kind: input, shape index: {}]   ;;  %s2493_s11 = inlined_call_operand.vmem [shape: f32[1,64], index: 11, kind: input, shape index: {}]   ;;  %s2494_s12 = inlined_call_operand.vmem [shape: bf16[64,32], index: 12, kind: input, shape index: {}]   ;;  %s2495_s13 = inlined_call_operand.vmem [shape: f32[1,32], index: 13, kind: input, shape index: {}]   ;;  %s2496_s14 = inlined_call_operand.hbm [shape: f32[2,8,32], index: 14, kind: output, shape index: {}]  }
   0x1   :  { %2510 = sst [smem:[#allocation24_spill]] %s2488_s6 }
   0x2   :  { %2511 = sst [smem:[#allocation25_spill]] %s2490_s8 }
   0x3   :  { %2512 = sst [smem:[#allocation26_spill]] %s2495_s13 }
   0x4   :  { %2513 = sst [smem:[#allocation27_spill]] %s2496_s14 }
   0x5   :  { %19 = vsyncpa [#allocation3], 0 }
   0x6   :  { %20 = vsyncpa [#allocation6], 0 }
   0x7   :  { %21 = vsyncpa [#allocation9], 0 }
   0x8   :  { %22 = vsyncpa [#allocation4], 0 }
   0x9   :  { %24 = vsyncpa [#allocation4 + $0x1], 0  ;;  %s2112_s29 = smov 0   ;;  %s2114_s30 = smov 0  }
   0xa   :  { %s2116_s15 = smov 0   ;;  %s2118_s16 = smov 0  }
   0xb LB: > { %2514 = sst [smem:[#allocation16_spill]] %s1999_s29  ;;  %s2133_s17 = sadd.s32 4294967295, %s2011_s16   ;;  %s2011_s16 = sphi %s2118_s16, %s2545_s16   ;;  %s2007_s15 = sphi %s2116_s15, %s2548_s15   ;;  %s2003_s30 = sphi %s2114_s30, %s2547_s30   ;;  %s1999_s29 = sphi %s2112_s29, %s2546_s29  }
   0xc   : > { %2515 = sst [smem:[#allocation17_spill]] %s2003_s30  ;;  %s1494_s18 = sadd.s32 4294967294, %s2011_s16  }
   0xd   : > { %2516 = sst [smem:[#allocation18_spill]] %s2007_s15  ;;  %s2137_s19 = sadd.s32 1, %s2011_s16  }
   0xe   : > { %2517 = sst [smem:[#allocation19_spill]] %s2011_s16  ;;  %s341_s20 = sadd.s32 1, %s2007_s15 }
   0xf   : > { %2518 = sst [smem:[#allocation20_spill]] %s2137_s19  ;;  %s338_s21 = ssub.s32 %s2011_s16, %s2137_s19 }
  0x10   : > { %p351_p0 = scmp.ne.s32.totalorder %s2007_s15, %s2003_s30  ;;  %p339_p1 = scmp.eq.s32.totalorder %s338_s21, 0 }
  0x11   : > { %p352_p2 = scmp.eq.s32.totalorder %s2133_s17, 1  ;;  %p357_p3 = scmp.ne.s32.totalorder %s2003_s30, %s1999_s29 }
  0x12   : > { %p358_p4 = scmp.eq.s32.totalorder %s1494_s18, 1  ;;  %p1495_p7 = scmp.ge.s32.totalorder %s2011_s16, 1 }
  0x13   : > { %s2148_s22 = scalar_select %p339_p1, %s2007_s15, %s341_s20  }
  0x14   : > { %p2150_p5 = por %p352_p2, %p351_p0  ;;  %p2154_p6 = por %p358_p4, %p357_p3 }
  0x15   : > { %2519 = sst [smem:[#allocation21_spill]] %s2148_s22  ;;  %p365_p8 = scmp.lt.s32.totalorder %s2011_s16, 3 }
  0x16   : > { %s2520_s23 = scalar_select %p2150_p5, 1, 0 }
  0x17   : > { %s2522_s24 = scalar_select %p2154_p6, 1, 0 }
  0x18   : > { %2521 = sst [smem:[#allocation22_spill]] %s2520_s23  ;;  %p2503_p9 = scmp.eq.s32.totalorder %s2133_s17, 0 }
  0x19   : > { %2523 = sst [smem:[#allocation23_spill]] %s2522_s24  ;;  %p2161_p10 = pnand %p1495_p7, %p365_p8 }
  0x1a   : > { %s2013_s26 = smov [#allocation5]   ;;  %s2014_s28 = smov [#allocation8]  }
  0x1b   : > { %s2524_s25 = scalar_select %p2161_p10, 1, 0 }
  0x1c   : > { %s400_s27 = sshll.u32 %s2013_s26, 4  ;;  %p1681_p11 = pneg %p2161_p10  ;;  %s401_s27 = int_to_ptr.vmem [resolvable:$true] %s400_s27 }
  0x1d   : > { %s422_s18 = sshll.u32 %s2014_s28, 4  ;;  %s2015_s21 = smov [#allocation2]   ;;  %s2173_s18 = int_to_ptr.vmem [resolvable:$true] %s422_s18 }
  0x1e   : > { %p2169_p12 = pnand %p2503_p9, %p1681_p11  ;;  %s383_s22 = sshll.u32 %s2015_s21, 4  ;;  %s2175_s22 = int_to_ptr.vmem [resolvable:$true] %s383_s22 }
  0x1f   : > { %s2526_s6 = sld [smem:[#allocation24_spill]] }
  0x20   : > { %p2185_p0 = pneg %p2169_p12 }
  0x25   : > { %s1797_s26 = scalar_lea.hbm %s2526_s6, 16 }
  0x26   : > { %p1798_p13 = scmp.ne.s32.totalorder %s2526_s6, %s1797_s26  ;;  %p1804_p3 = scmp.lt.u32.totalorder %s1797_s26, %s2526_s6 }
  0x28   : > { %p1800_p1 = pnand %p2185_p0, %p1798_p13 }
  0x2a   : > { %p1801_p2 = pneg %p1800_p1 }
  0x2c   : > { %p1806_p4 = pnand %p1804_p3, %p1801_p2 }
  0x2e   : > { %1809 = shalt.err (!%p1806_p4)
}
  0x2f   : > { %s1810_s15 = scalar_lea.vmem %s401_s27, 16  ;;  %s1817_s29 = scalar_lea.vmem %s401_s27, 32 }
  0x30   : > { %p1811_p7 = scmp.ne.s32.totalorder %s401_s27, %s1810_s15  ;;  %p1818_p9 = scmp.lt.s32.totalorder %s401_s27, %s401_s27 }
  0x31   : > { %p1819_p6 = scmp.lt.s32.totalorder %s1817_s29, %s1810_s15 }
  0x32   : > { %p1813_p8 = pnand %p1811_p7, %p2185_p0 }
  0x33   : > { %p1820_p5 = por %p1819_p6, %p1818_p9 }
  0x34   : > { %p1814_p11 = pneg %p1813_p8 }
  0x36   : > { %p1821_p10 = pnand %p1820_p5, %p1814_p11 }
  0x38   : > { %1824 = shalt.err (!%p1821_p10)
}
  0x39   : > { %1687 = dma.hbm_to_vmem [thread:$0]  (!%p2169_p12), %s2526_s6, 16, %s401_s27, [#allocation6]  }
  0x3a   : > { %s2528_s8 = sld [smem:[#allocation25_spill]] }
  0x40   : > { %s1825_s21 = scalar_lea.hbm %s2528_s8, 16 }
  0x41   : > { %p1826_p13 = scmp.ne.s32.totalorder %s2528_s8, %s1825_s21  ;;  %p1832_p5 = scmp.lt.u32.totalorder %s1825_s21, %s2528_s8 }
  0x43   : > { %p1828_p1 = pnand %p1826_p13, %p2185_p0 }
  0x45   : > { %p1829_p6 = pneg %p1828_p1 }
  0x47   : > { %p1834_p9 = pnand %p1832_p5, %p1829_p6 }
  0x49   : > { %1837 = shalt.err (!%p1834_p9)
}
  0x4a   : > { %s1838_s27 = scalar_lea.vmem %s2173_s18, 16  ;;  %s1845_s14 = scalar_lea.vmem %s2173_s18, 32 }
  0x4b   : > { %p1839_p10 = scmp.ne.s32.totalorder %s2173_s18, %s1838_s27  ;;  %p1846_p4 = scmp.lt.s32.totalorder %s2173_s18, %s2173_s18 }
  0x4c   : > { %p1847_p7 = scmp.lt.s32.totalorder %s1845_s14, %s1838_s27 }
  0x4d   : > { %p1841_p2 = pnand %p1839_p10, %p2185_p0 }
  0x4e   : > { %p1848_p8 = por %p1847_p7, %p1846_p4 }
  0x4f   : > { %p1842_p3 = pneg %p1841_p2 }
  0x51   : > { %p1849_p11 = pnand %p1848_p8, %p1842_p3 }
  0x53   : > { %1852 = shalt.err (!%p1849_p11)
}
  0x54   : > { %1693 = dma.hbm_to_vmem [thread:$0]  (!%p2169_p12), %s2528_s8, 16, %s2173_s18, [#allocation9]  }
  0x55   : > { %s1853_s26 = scalar_lea.hbm %s2486_s4, 256 }
  0x56   : > { %p1854_p13 = scmp.ne.s32.totalorder %s2486_s4, %s1853_s26  ;;  %p1860_p5 = scmp.lt.u32.totalorder %s1853_s26, %s2486_s4 }
  0x58   : > { %p1856_p1 = pnand %p1854_p13, %p2185_p0 }
  0x5a   : > { %p1857_p6 = pneg %p1856_p1 }
  0x5c   : > { %p1862_p9 = pnand %p1860_p5, %p1857_p6 }
  0x5e   : > { %1865 = shalt.err (!%p1862_p9)
}
  0x5f   : > { %s1866_s18 = scalar_lea.vmem %s2175_s22, 256  ;;  %p1874_p4 = scmp.lt.s32.totalorder %s2175_s22, %s2175_s22 }
  0x60   : > { %p1867_p10 = scmp.ne.s32.totalorder %s2175_s22, %s1866_s18  ;;  %p1875_p7 = scmp.lt.s32.totalorder %s1866_s18, %s1866_s18 }
  0x62   : > { %p1869_p2 = pnand %p1867_p10, %p2185_p0  ;;  %p1876_p8 = por %p1875_p7, %p1874_p4 }
  0x64   : > { %p1870_p3 = pneg %p1869_p2 }
  0x66   : > { %p1877_p11 = pnand %p1876_p8, %p1870_p3 }
  0x68   : > { %1880 = shalt.err (!%p1877_p11)
}
  0x69   : > { %s2016_s14 = smov 64   ;;  %s2017_s23 = smov 4  }
  0x6a   : > { %1684 = dma.hbm_to_vmem [thread:$0]  (!%p2169_p12), %s2486_s4, 256, %s2175_s22, [#allocation3], %s2016_s14, %s2016_s14, %s2017_s23  }
  0x6b   : > { %s2018_s16 = smov [#allocation7]   ;;  %s2019_s21 = smov [#allocation10]  }
  0x6c   : > { %s411_s26 = sshll.u32 %s2018_s16, 4  ;;  %s433_s15 = sshll.u32 %s2019_s21, 4  ;;  %s412_s26 = int_to_ptr.vmem [resolvable:$true] %s411_s26  ;;  %s434_s15 = int_to_ptr.vmem [resolvable:$true] %s433_s15 }
  0x6d   : > { %s1881_s18 = scalar_lea.hbm %s2489_s7, 16 }
  0x6e   : > { %p1882_p13 = scmp.ne.s32.totalorder %s2489_s7, %s1881_s18  ;;  %p1888_p5 = scmp.lt.u32.totalorder %s1881_s18, %s2489_s7 }
  0x70   : > { %p1884_p1 = pnand %p1882_p13, %p2185_p0 }
  0x72   : > { %p1885_p6 = pneg %p1884_p1 }
  0x74   : > { %p1890_p9 = pnand %p1888_p5, %p1885_p6 }
  0x76   : > { %1893 = shalt.err (!%p1890_p9)
}
  0x77   : > { %s1894_s22 = scalar_lea.vmem %s412_s26, 16  ;;  %s1901_s14 = scalar_lea.vmem %s412_s26, 32 }
  0x78   : > { %p1895_p10 = scmp.ne.s32.totalorder %s412_s26, %s1894_s22  ;;  %p1902_p4 = scmp.lt.s32.totalorder %s412_s26, %s412_s26 }
  0x79   : > { %p1903_p7 = scmp.lt.s32.totalorder %s1901_s14, %s1894_s22 }
  0x7a   : > { %p1897_p2 = pnand %p1895_p10, %p2185_p0 }
  0x7b   : > { %p1904_p8 = por %p1903_p7, %p1902_p4 }
  0x7c   : > { %p1898_p3 = pneg %p1897_p2 }
  0x7e   : > { %p1905_p11 = pnand %p1904_p8, %p1898_p3 }
  0x80   : > { %1908 = shalt.err (!%p1905_p11)
}
  0x81   : > { %1690 = dma.hbm_to_vmem [thread:$0]  (!%p2169_p12), %s2489_s7, 16, %s412_s26, [#allocation6]  }
  0x82   : > { %s1909_s23 = scalar_lea.hbm %s2491_s9, 16 }
  0x83   : > { %p1910_p13 = scmp.ne.s32.totalorder %s2491_s9, %s1909_s23  ;;  %p1916_p5 = scmp.lt.u32.totalorder %s1909_s23, %s2491_s9 }
  0x85   : > { %p1912_p1 = pnand %p1910_p13, %p2185_p0 }
  0x87   : > { %p1913_p6 = pneg %p1912_p1 }
  0x89   : > { %p1918_p9 = pnand %p1916_p5, %p1913_p6 }
  0x8b   : > { %1921 = shalt.err (!%p1918_p9)
}
  0x8c   : > { %s1922_s29 = scalar_lea.vmem %s434_s15, 16  ;;  %s1929_s26 = scalar_lea.vmem %s434_s15, 32 }
  0x8d   : > { %p1923_p10 = scmp.ne.s32.totalorder %s434_s15, %s1922_s29  ;;  %p1930_p4 = scmp.lt.s32.totalorder %s434_s15, %s434_s15 }
  0x8e   : > { %p1931_p7 = scmp.lt.s32.totalorder %s1929_s26, %s1922_s29 }
  0x8f   : > { %p1925_p2 = pnand %p1923_p10, %p2185_p0 }
  0x90   : > { %p1932_p8 = por %p1931_p7, %p1930_p4 }
  0x91   : > { %p1926_p3 = pneg %p1925_p2 }
  0x93   : > { %p1933_p11 = pnand %p1932_p8, %p1926_p3 }
  0x95   : > { %1936 = shalt.err (!%p1933_p11)
}
  0x96   : > { %1696 = dma.hbm_to_vmem [thread:$0]  (!%p2169_p12), %s2491_s9, 16, %s434_s15, [#allocation9]  }
  0x97   : > { %p2529_p13 = scmp.ne.s32.totalorder %s2524_s25, 0 }
  0x98   : > { %p2530_p1 = scmp.eq.s32.totalorder (!%p2529_p13), %s2133_s17, 0 }
  0x99   : > { %472 = sbr.rel (%p2529_p13) target bundleno = 2732 (0xaac), region = 76 }
  0xa0   : > { %1982 = dma.done.wait (%p2530_p1), [#allocation3], 256   ;;  %p2531_p0 = pmov %p2530_p1 }
  0xa2   : > { %1984 = vsyncadd (%p2531_p0), [#allocation3], 4294967040  ;;  %p2532_p6 = pmov %p2531_p0 }
  0xa3   : > { %p2533_p5 = pmov %p2531_p0 }
  0xa4   : > { %1986 = dma.done.wait (%p2532_p6), [#allocation6], 32  }
  0xa5   : > { %1988 = vsyncadd (%p2533_p5), [#allocation6], 4294967264  ;;  %p2534_p9 = pmov %p2531_p0 }
  0xa6   : > { %p2535_p12 = pmov %p2531_p0 }
  0xa7   : > { %1990 = dma.done.wait (%p2534_p9), [#allocation9], 32  }
  0xa8   : > { %1992 = vsyncadd (%p2535_p12), [#allocation9], 4294967264  ;;  %p537_p10 = scmp.lt.s32.totalorder %s2133_s17, 1  ;;  %v2020_v0 = vmov 0.0   ;;  %vm2021_vm0 = vmmov 0   ;;  %v1767_v1 = vld [vmem:[%s2484_s2] sm:$0xff]  }
  0xa9   : > { %1575 = vmatprep.subr.bf16.mxu0 %v2020_v0  ;;  %1579 = vmatprep.mubr.msk.bf16.mxu0 %vm2021_vm0, %v2020_v0  ;;  %v1768_v2 = vld [vmem:[%s2484_s2 + $0x8] sm:$0xff]   ;;  %vm573_vm1 = vcmask 261120   ;;  %v1511_v7 = vld [vmem:[%s2485_s3] ss:$0 sm:$0xff]  ;;  %s2022_s21 = smov 120   ;;  %s2023_s29 = smov 96  }
  0xaa   : > { %s538_s25 = scalar_select %p537_p10, %s2133_s17, 1  ;;  %1583 = vmatprep.subr.bf16.mxu1 %v2020_v0  ;;  %1585 = vmatprep.mubr.msk.bf16.mxu1 %vm2021_vm0, %v2020_v0  ;;  %vm621_vm2 = vcmask 64512   ;;  %vm685_vm3 = vcmask 1043456   ;;  %vm1072_vm4 = vcmask 130048   ;;  %vm1074_vm5 = vcmask 195584  }
  0xab   : > { %1576 = vmatpush3.bf16.msra.mxu0 %v1767_v1  ;;  %s2024_s26 = smov 80   ;;  %s2025_s27 = smov 88   ;;  %vm1284_vm7 = vcmask 523264  }
  0xac   : > { %s1509_s20 = sshll.u32 %s538_s25, 3  ;;  %1577 = vmatprep.subr.bf16.mxu0 %v2020_v0  ;;  %s2026_s18 = smov 72  }
  0xad   : > { %s540_s22 = scalar_lea.vmem %s2482_s0, %s1509_s20  ;;  %s544_s8 = scalar_lea.vmem %s2483_s1, %s1509_s20 }
  0xae   : > { %v2318_v3 = vld [vmem:[%s540_s22] sm:$0xff]  ;;  %s2027_s25 = smov 112   ;;  %s2028_s20 = smov 104  }
  0xaf   : > { %v547_v4 = vld [vmem:[%s544_s8] sm:$0xff]  ;;  %1578 = vmatpush3.bf16.msra.mxu0 %v1768_v2  ;;  %s2029_s28 = smov 56   ;;  %s2030_s15 = smov 64  }
  0xb0   : > { %v548_v5 = vadd.f32 %v547_v4, %v2318_v3  ;;  %1589 = vmatprep.subr.bf16.mxu0 %v2020_v0  ;;  %s2031_s22 = smov 40   ;;  %s2032_s14 = smov 48  }
  0xb1   : > { %s2033_s6 = smov 8   ;;  %s2034_s8 = smov 16  }
  0xb2   : > { %v549_v6 = vpack.c.bf16 %v548_v5, %v548_v5  ;;  %s2035_s13 = smov 24   ;;  %s2537_s30 = sld [smem:[#allocation17_spill]] }
  0xb3   : > { %s2538_s24 = sld [smem:[#allocation22_spill]]  ;;  %s1542_s16 = sshll.u32 %s2133_s17, 7 }
  0xb4   : > { %1580 = vmatmul.mubr.msk.bf16.vlgmr.msra.gmra.mrb[0].mxu0 %vm573_vm1, %v549_v6  ;;  %s2036_s17 = smov [#allocation11]  }
  0xb5   : > { %1591 = vmatprep.mubr.msk.bf16.mxu0 %vm2021_vm0, %v2020_v0 }
  0xb8   : > { %s534_s23 = sand.u32 1, %s2537_s30  }
  0xb9   : > { %s1508_s19 = sshll.u32 %s534_s23, 3  ;;  %p2540_p3 = scmp.ne.s32.totalorder %s2538_s24, 0 }
 0x187   : > { %v611_v8 = vpop.f32.mrb[0].mxu0 }
 0x188   : > { %v612_v9 = vadd.f32 %v1511_v7, %v611_v8  ;;  %v1581_v10 = vpop.f32.mrb[1].mxu0 }
 0x189   : > { %v614_v11 = vpop.f32.mrb[2].mxu0 }
 0x18a   : > { %v2329_v12 = vpack.c.bf16 %v612_v9, %v612_v9  ;;  %v1582_v13 = vpop.f32.mrb[3].mxu0 }
 0x18c   : > { %729 = vrot.lane.b32.xlu1 %v2329_v12, %s2022_s21  ;;  %619 = vrot.lane.b32.xlu0 %v2329_v12, %s2023_s29  ;;  %s536_s21 = scalar_lea.vmem [#allocation11], %s1508_s19 }
 0x18d   : > { %s1373_s29 = sshll.u32 %s536_s21, 4  ;;  %s2441_s29 = int_to_ptr.vmem [resolvable:$true] %s1373_s29 }
 0x190   : > { %841 = vrot.lane.b32.xlu1 %v2329_v12, %s2024_s26  ;;  %731 = vrot.lane.b32.xlu0 %v2329_v12, %s2025_s27 }
 0x194   : > { %951 = vrot.lane.b32.xlu1 %v2329_v12, %s2026_s18  ;;  %839 = vrot.lane.b32.xlu0 %v2329_v12, %s2027_s25  ;;  %s2539_s18 = sld [smem:[#allocation27_spill]] }
 0x198   : > { %949 = vrot.lane.b32.xlu0 %v2329_v12, %s2028_s20  ;;  %s1360_s20 = scalar_lea.sflag [#allocation4], %s534_s23 }
 0x19a   : > { %s2439_s25 = scalar_lea.hbm %s2539_s18, %s1542_s16 }
 0x1fe   : > { %v620_v14 = vpop.permute.xlu0 %619  ;;  %v730_v17 = vpop.permute.xlu1 %729 }
 0x1ff   : > { %v626_v15 = vsel %vm621_vm2, %v620_v14, 0 }
 0x200   : > { %1584 = vmatpush3.bf16.xpose.msra.mxu1 %v626_v15 }
 0x201   : > { %1595 = vmatprep.subr.bf16.mxu1 %v2020_v0 }
 0x202   : > { %v732_v16 = vpop.permute.xlu0 %731  ;;  %v842_v19 = vpop.permute.xlu1 %841 }
 0x203   : > { %v737_v18 = vsel %vm621_vm2, %v732_v16, 0  ;;  %v847_v20 = vsel %vm621_vm2, %v842_v19, 0 }
 0x206   : > { %v952_v21 = vpop.permute.xlu1 %951  ;;  %v840_v22 = vpop.permute.xlu0 %839 }
 0x207   : > { %1586 = vmatmul.mubr.msk.bf16.vlgmr.msra.gmra.mrb[0].mxu1 %vm621_vm2, %v2329_v12  ;;  %v957_v23 = vsel %vm621_vm2, %v952_v21, 0 }
 0x208   : > { %1596 = vmatpush3.bf16.xpose.msra.mxu1 %v737_v18  ;;  %1597 = vmatprep.mubr.msk.bf16.mxu1 %vm2021_vm0, %v2020_v0 }
 0x209   : > { %1607 = vmatprep.subr.bf16.mxu1 %v2020_v0 }
 0x20a   : > { %v950_v24 = vpop.permute.xlu0 %949 }
 0x20f   : > { %1598 = vmatmul.mubr.msk.bf16.vlgmr.msra.gmra.mrb[4].mxu1 %vm621_vm2, %v730_v17 }
 0x210   : > { %1608 = vmatpush3.bf16.xpose.msra.mxu1 %v847_v20  ;;  %1609 = vmatprep.mubr.msk.bf16.mxu1 %vm2021_vm0, %v2020_v0 }
 0x211   : > { %1619 = vmatprep.subr.bf16.mxu1 %v2020_v0 }
 0x217   : > { %1610 = vmatmul.mubr.msk.bf16.vlgmr.msra.gmra.mrb[8].mxu1 %vm621_vm2, %v840_v22 }
 0x218   : > { %1620 = vmatpush3.bf16.xpose.msra.mxu1 %v957_v23  ;;  %1621 = vmatprep.mubr.msk.bf16.mxu1 %vm2021_vm0, %v2020_v0 }
 0x219   : > { %1631 = vmatprep.subr.bf16.mxu1 %v2020_v0 }
 0x21f   : > { %1622 = vmatmul.mubr.msk.bf16.vlgmr.msra.gmra.mrb[12].mxu1 %vm621_vm2, %v950_v24 }
 0x220   : > { %1635 = vmatprep.mubr.msk.bf16.mxu1 %vm2021_vm0, %v2020_v0 }
 0x2da   : > { %v662_v25 = vpop.f32.mrb[0].mxu1 }
 0x2db   : > { %v1587_v26 = vpop.f32.mrb[1].mxu1  ;;  %v668_v27 = vsel %vm621_vm2, %v662_v25, -inf }
 0x2dc   : > { %669 = vmax.xlane.f32.xlu1 %v668_v27  ;;  %v665_v28 = vpop.f32.mrb[2].mxu1 }
 0x2dd   : > { %v1588_v29 = vpop.f32.mrb[3].mxu1 }
 0x2e2   : > { %v773_v30 = vpop.f32.mrb[4].mxu1 }
 0x2e3   : > { %v1599_v31 = vpop.f32.mrb[5].mxu1  ;;  %v779_v32 = vsel %vm621_vm2, %v773_v30, -inf }
 0x2e4   : > { %780 = vmax.xlane.f32.xlu0 %v779_v32  ;;  %v776_v33 = vpop.f32.mrb[6].mxu1 }
 0x2e5   : > { %v1600_v34 = vpop.f32.mrb[7].mxu1 }
 0x2ea   : > { %v883_v35 = vpop.f32.mrb[8].mxu1 }
 0x2eb   : > { %v1611_v36 = vpop.f32.mrb[9].mxu1  ;;  %v889_v37 = vsel %vm621_vm2, %v883_v35, -inf }
 0x2ec   : > { %890 = vmax.xlane.f32.xlu0 %v889_v37  ;;  %v886_v38 = vpop.f32.mrb[10].mxu1  ;;  %v1770_v36 = vld [vmem:[#allocation2 + $0x8] sm:$0xff]  }
 0x2ed   : > { %v1612_v39 = vpop.f32.mrb[11].mxu1 }
 0x2f2   : > { %v993_v40 = vpop.f32.mrb[12].mxu1 }
 0x2f3   : > { %v1623_v41 = vpop.f32.mrb[13].mxu1  ;;  %v999_v42 = vsel %vm621_vm2, %v993_v40, -inf }
 0x2f4   : > { %1000 = vmax.xlane.f32.xlu1 %v999_v42  ;;  %v996_v43 = vpop.f32.mrb[14].mxu1 }
 0x2f5   : > { %v1624_v44 = vpop.f32.mrb[15].mxu1 }
 0x369   : > { %v670_v45 = vpop.xlane.xlu1 %669 }
 0x36a   : > { %v671_v46 = vsub.f32 %v662_v25, %v670_v45 }
 0x36c   : > { %v672_v47 = vmul.f32 1.442695, %v671_v46 }
 0x36e   : > { %1777 = vpow2.f32 %v672_v47 }
 0x371   : > { %v781_v48 = vpop.xlane.xlu0 %780 }
 0x372   : > { %v782_v49 = vsub.f32 %v773_v30, %v781_v48 }
 0x374   : > { %v783_v50 = vmul.f32 1.442695, %v782_v49 }
 0x376   : > { %1779 = vpow2.f32 %v783_v50 }
 0x378   : > { %v1778_v51 = vpop.eup %1777 }
 0x379   : > { %v891_v52 = vpop.xlane.xlu0 %890  ;;  %v674_v53 = vsel %vm621_vm2, %v1778_v51, 0.0 }
 0x37a   : > { %v892_v54 = vsub.f32 %v883_v35, %v891_v52  ;;  %675 = vadd.xlane.f32.xlu0 %v674_v53  ;;  %v1769_v35 = vld [vmem:[#allocation2] sm:$0xff]  }
 0x37b   : > { %1632 = vmatpush3.bf16.msra.mxu1 %v1769_v35  ;;  %v1523_v52 = vld [vmem:[%s2487_s5] ss:$0 sm:$0xff] }
 0x37c   : > { %v893_v55 = vmul.f32 1.442695, %v892_v54  ;;  %1633 = vmatprep.subr.bf16.mxu1 %v2020_v0 }
 0x37e   : > { %1781 = vpow2.f32 %v893_v55 }
 0x37f   : > { %1634 = vmatpush3.bf16.msra.mxu1 %v1770_v36 }
 0x380   : > { %v1780_v56 = vpop.eup %1779  ;;  %1647 = vmatprep.subr.bf16.mxu1 %v2020_v0 }
 0x381   : > { %v785_v57 = vsel %vm621_vm2, %v1780_v56, 0.0  ;;  %v1001_v60 = vpop.xlane.xlu1 %1000 }
 0x382   : > { %786 = vadd.xlane.f32.xlu1 %v785_v57  ;;  %v1002_v61 = vsub.f32 %v993_v40, %v1001_v60 }
 0x384   : > { %v1003_v62 = vmul.f32 1.442695, %v1002_v61 }
 0x386   : > { %1783 = vpow2.f32 %v1003_v62 }
 0x388   : > { %v1782_v58 = vpop.eup %1781 }
 0x389   : > { %v895_v59 = vsel %vm621_vm2, %v1782_v58, 0.0 }
 0x38a   : > { %896 = vadd.xlane.f32.xlu0 %v895_v59 }
 0x390   : > { %v1784_v63 = vpop.eup %1783 }
 0x391   : > { %v1005_v1 = vsel %vm621_vm2, %v1784_v63, 0.0 }
 0x393   : > { %791 = vrot.lane.b32.xlu1 %v2329_v12, %s2029_s28  ;;  %s1937_s28 = scalar_lea.vmem %s2441_s29, 128 }
 0x394   : > { %p1938_p2 = scmp.ne.s32.totalorder %s2441_s29, %s1937_s28 }
 0x396   : > { %p1939_p4 = pnand %p1938_p2, %p2540_p3 }
 0x398   : > { %p1940_p7 = pneg %p1939_p4 }
 0x3a0   : > { %680 = vrot.lane.b32.xlu0 %v2329_v12, %s2030_s15  ;;  %s1941_s15 = sshll.u32 %s2036_s17, 4  ;;  %s1942_s15 = int_to_ptr.vmem [resolvable:$false] %s1941_s15 }
 0x3a1   : > { %p1944_p8 = scmp.lt.s32.totalorder %s2441_s29, %s1942_s15 }
 0x3a4   : > { %1011 = vrot.lane.b32.xlu0 %v2329_v12, %s2031_s22  ;;  %s1943_s22 = scalar_lea.vmem %s1942_s15, 256 }
 0x3a5   : > { %p1945_p11 = scmp.lt.s32.totalorder %s1943_s22, %s1937_s28 }
 0x3a7   : > { %p1946_p13 = por %p1945_p11, %p1944_p8 }
 0x3a9   : > { %p1947_p1 = pnand %p1946_p13, %p1940_p7 }
 0x3b7   : > { %1006 = vadd.xlane.f32.xlu1 %v1005_v1 }
 0x3c8   : > { %901 = vrot.lane.b32.xlu1 %v2329_v12, %s2032_s14 }
 0x407   : > { %v676_v2 = vpop.xlane.xlu0 %675 }
 0x408   : > { %1785 = vrcp.f32 %v676_v2  ;;  %v1771_v2 = vld [vmem:[%s2492_s10] sm:$0xff]  }
 0x40f   : > { %v787_v4 = vpop.xlane.xlu1 %786 }
 0x410   : > { %1787 = vrcp.f32 %v787_v4  ;;  %v1773_v4 = vld [vmem:[%s2494_s12] sm:$0xff]  }
 0x412   : > { %v1786_v5 = vpop.eup %1785 }
 0x413   : > { %v678_v7 = vmul.f32 %v1786_v5, %v1778_v51  ;;  %v792_v10 = vpop.permute.xlu1 %791  ;;  %v1774_v5 = vld [vmem:[%s2494_s12 + $0x8] sm:$0xff]  }
 0x414   : > { %v797_v14 = vsel %vm685_vm3, %v792_v10, 0  ;;  %v1527_v10 = vld [vmem:[#allocation5] ss:$0 sm:$0xff] }
 0x415   : > { %v679_v11 = vpack.c.bf16 %v678_v7, %v678_v7 }
 0x417   : > { %v897_v6 = vpop.xlane.xlu0 %896 }
 0x418   : > { %1789 = vrcp.f32 %v897_v6 }
 0x41a   : > { %v1788_v13 = vpop.eup %1787 }
 0x41b   : > { %v681_v8 = vpop.permute.xlu0 %680  ;;  %v789_v12 = vmul.f32 %v1788_v13, %v1780_v56  ;;  %v1528_v13 = vld [vmem:[#allocation7] ss:$0 sm:$0xff] }
 0x41c   : > { %v687_v9 = vsel %vm685_vm3, %v681_v8, 0 }
 0x41d   : > { %1590 = vmatpush3.bf16.msra.mxu0 %v687_v9  ;;  %v790_v15 = vpack.c.bf16 %v789_v12, %v789_v12 }
 0x41e   : > { %1601 = vmatprep.subr.bf16.mxu0 %v2020_v0 }
 0x41f   : > { %v1012_v21 = vpop.permute.xlu0 %1011 }
 0x420   : > { %1592 = vmatmul.mubr.msk.bf16.vlgmr.msra.gmra.mrb[4].mxu0 %vm621_vm2, %v679_v11  ;;  %v1017_v23 = vsel %vm685_vm3, %v1012_v21, 0 }
 0x421   : > { %1602 = vmatpush3.bf16.msra.mxu0 %v797_v14  ;;  %1603 = vmatprep.mubr.msk.bf16.mxu0 %vm2021_vm0, %v2020_v0 }
 0x422   : > { %1613 = vmatprep.subr.bf16.mxu0 %v2020_v0  ;;  %v1790_v16 = vpop.eup %1789 }
 0x423   : > { %v899_v18 = vmul.f32 %v1790_v16, %v1782_v58  ;;  %v1775_v16 = vld [vmem:[%s2494_s12 + $0x10] sm:$0xff]  }
 0x425   : > { %v900_v22 = vpack.c.bf16 %v899_v18, %v899_v18  ;;  %v1529_v18 = vld [vmem:[%s2493_s11] ss:$0 sm:$0xff] }
 0x428   : > { %1604 = vmatmul.mubr.msk.bf16.vlgmr.msra.gmra.mrb[8].mxu0 %vm621_vm2, %v790_v15 }
 0x429   : > { %1615 = vmatprep.mubr.msk.bf16.mxu0 %vm2021_vm0, %v2020_v0 }
 0x444   : > { %v1007_v17 = vpop.xlane.xlu1 %1006 }
 0x445   : > { %1791 = vrcp.f32 %v1007_v17  ;;  %v1776_v17 = vld [vmem:[%s2494_s12 + $0x18] sm:$0xff]  }
 0x448   : > { %v902_v19 = vpop.permute.xlu1 %901 }
 0x449   : > { %v907_v20 = vsel %vm685_vm3, %v902_v19, 0 }
 0x44a   : > { %1614 = vmatpush3.bf16.msra.mxu0 %v907_v20 }
 0x44b   : > { %1625 = vmatprep.subr.bf16.mxu0 %v2020_v0 }
 0x44d   : > { %1616 = vmatmul.mubr.msk.bf16.vlgmr.msra.gmra.mrb[12].mxu0 %vm621_vm2, %v900_v22 }
 0x44e   : > { %1626 = vmatpush3.bf16.msra.mxu0 %v1017_v23  ;;  %1627 = vmatprep.mubr.msk.bf16.mxu0 %vm2021_vm0, %v2020_v0 }
 0x44f   : > { %v1792_v24 = vpop.eup %1791  ;;  %1639 = vmatprep.subr.bf16.mxu0 %v2020_v0 }
 0x450   : > { %v1009_v25 = vmul.f32 %v1792_v24, %v1784_v63 }
 0x452   : > { %v1010_v26 = vpack.c.bf16 %v1009_v25, %v1009_v25 }
 0x455   : > { %1628 = vmatmul.mubr.msk.bf16.vlgmr.msra.gmra.mrb[16].mxu0 %vm621_vm2, %v1010_v26 }
 0x456   : > { %1643 = vmatprep.mubr.msk.bf16.mxu0 %vm2021_vm0, %v2020_v0  ;;  %1640 = vmatpush3.bf16.msra.mxu0 %v1771_v2 }
 0x457   : > { %1641 = vmatprep.subr.bf16.mxu0 %v2020_v0 }
 0x4f3   : > { %v723_v27 = vpop.f32.mrb[4].mxu0 }
 0x4f4   : > { %v1593_v28 = vpop.f32.mrb[5].mxu0 }
 0x4f5   : > { %v726_v29 = vpop.f32.mrb[6].mxu0 }
 0x4f6   : > { %v1594_v30 = vpop.f32.mrb[7].mxu0 }
 0x4fb   : > { %v833_v31 = vpop.f32.mrb[8].mxu0 }
 0x4fc   : > { %1060 = vrot.lane.b32.xlu1 %v833_v31, %s2033_s6  ;;  %v1605_v32 = vpop.f32.mrb[9].mxu0 }
 0x4fd   : > { %v836_v33 = vpop.f32.mrb[10].mxu0 }
 0x4fe   : > { %v1606_v34 = vpop.f32.mrb[11].mxu0 }
 0x520   : > { %v943_v37 = vpop.f32.mrb[12].mxu0 }
 0x521   : > { %1064 = vrot.lane.b32.xlu0 %v943_v37, %s2034_s8  ;;  %v1617_v38 = vpop.f32.mrb[13].mxu0 }
 0x522   : > { %v946_v39 = vpop.f32.mrb[14].mxu0 }
 0x523   : > { %v1618_v40 = vpop.f32.mrb[15].mxu0 }
 0x528   : > { %v1053_v41 = vpop.f32.mrb[16].mxu0 }
 0x529   : > { %1068 = vrot.lane.b32.xlu1 %v1053_v41, %s2035_s13  ;;  %v1629_v42 = vpop.f32.mrb[17].mxu0  ;;  %s2536_s13 = sld [smem:[#allocation26_spill]] }
 0x52a   : > { %v1056_v43 = vpop.f32.mrb[18].mxu0 }
 0x52b   : > { %v1630_v44 = vpop.f32.mrb[19].mxu0  ;;  %v1539_v43 = vld [vmem:[#allocation8] ss:$0 sm:$0xff] }
 0x56e   : > { %v1061_v45 = vpop.permute.xlu1 %1060 }
 0x56f   : > { %v1071_v47 = vsel %vm621_vm2, %v723_v27, %v1061_v45  ;;  %v1540_v45 = vld [vmem:[#allocation10] ss:$0 sm:$0xff] }
 0x593   : > { %v1065_v46 = vpop.permute.xlu0 %1064 }
 0x594   : > { %v1073_v48 = vsel %vm1072_vm4, %v1071_v47, %v1065_v46 }
 0x59b   : > { %v1069_v49 = vpop.permute.xlu1 %1068 }
 0x59c   : > { %v1075_v50 = vsel %vm1074_vm5, %v1073_v48, %v1069_v49 }
 0x59d   : > { %v1076_v51 = vpack.c.bf16 %v1075_v50, %v1075_v50 }
 0x59f   : > { %1636 = vmatmul.mubr.msk.bf16.vlgmr.msra.gmra.mrb[16].mxu1 %vm573_vm1, %v1076_v51 }
 0x5a0   : > { %1655 = vmatprep.mubr.msk.bf16.mxu1 %vm2021_vm0, %v2020_v0  ;;  %1648 = vmatpush3.bf16.msra.mxu1 %v1773_v4 }
 0x5a1   : > { %1649 = vmatprep.subr.bf16.mxu1 %v2020_v0 }
 0x5a4   : > { %1650 = vmatpush3.bf16.msra.mxu1 %v1774_v5 }
 0x5a5   : > { %1651 = vmatprep.subr.bf16.mxu1 %v2020_v0 }
 0x5a8   : > { %1652 = vmatpush3.bf16.msra.mxu1 %v1775_v16 }
 0x5a9   : > { %1653 = vmatprep.subr.bf16.mxu1 %v2020_v0  ;;  %v1533_v0 = vld [vmem:[%s2536_s13] ss:$0 sm:$0xff] }
 0x5ac   : > { %1654 = vmatpush3.bf16.msra.mxu1 %v1776_v17 }
 0x672   : > { %v1137_v53 = vpop.f32.mrb[16].mxu1 }
 0x673   : > { %v1138_v54 = vadd.f32 %v1523_v52, %v1137_v53  ;;  %v1637_v55 = vpop.f32.mrb[17].mxu1 }
 0x674   : > { %v1140_v56 = vpop.f32.mrb[18].mxu1 }
 0x675   : > { %v1638_v57 = vpop.f32.mrb[19].mxu1  ;;  %v1143_v58 = vadd.f32 %v1138_v54, %v2318_v3  ;;  %v1772_v3 = vld [vmem:[%s2492_s10 + $0x8] sm:$0xff]  }
 0x676   : > { %1642 = vmatpush3.bf16.msra.mxu0 %v1772_v3 }
 0x677   : > { %v1144_v59 = vsel %vm573_vm1, %v1143_v58, 0.0 }
 0x678   : > { %1145 = vadd.xlane.f32.xlu0 %v1144_v59 }
 0x705   : > { %v1146_v60 = vpop.xlane.xlu0 %1145 }
 0x706   : > { %v1148_v61 = vmul.f32 0.03125, %v1146_v60 }
 0x708   : > { %v1149_v62 = vsub.f32 %v1143_v58, %v1148_v61 }
 0x70a   : > { %v1150_v63 = vmul.f32 %v1149_v62, %v1149_v62 }
 0x70c   : > { %v1151_v1 = vsel %vm573_vm1, %v1150_v63, 0.0 }
 0x70d   : > { %1152 = vadd.xlane.f32.xlu1 %v1151_v1 }
 0x79a   : > { %v1153_v6 = vpop.xlane.xlu1 %1152 }
 0x79b   : > { %v1154_v7 = vmul.f32 0.03125, %v1153_v6 }
 0x79d   : > { %v1155_v8 = vadd.f32 1e-05, %v1154_v7 }
 0x79f   : > { %1793 = vrsqrt.f32 %v1155_v8 }
 0x7a9   : > { %v1794_v9 = vpop.eup %1793 }
 0x7aa   : > { %v1157_v11 = vmul.f32 %v1794_v9, %v1149_v62 }
 0x7ac   : > { %v1165_v14 = vmul.f32 %v1527_v10, %v1157_v11 }
 0x7ae   : > { %v1173_v12 = vadd.f32 %v1528_v13, %v1165_v14 }
 0x7b0   : > { %v1174_v15 = vpack.c.bf16 %v1173_v12, %v1173_v12 }
 0x7b2   : > { %1644 = vmatmul.mubr.msk.bf16.vlgmr.msra.gmra.mrb[20].mxu0 %vm573_vm1, %v1174_v15 }
 0x885   : > { %v1235_v19 = vpop.f32.mrb[20].mxu0 }
 0x886   : > { %v1236_v20 = vadd.f32 %v1529_v18, %v1235_v19  ;;  %v1645_v21 = vpop.f32.mrb[21].mxu0 }
 0x887   : > { %v1238_v22 = vpop.f32.mrb[22].mxu0 }
 0x888   : > { %vm1241_vm6 = vcmp.ge.f32.partialorder %v1236_v20, 0.0  ;;  %v1242_v23 = vmul.f32 0.01, %v1236_v20  ;;  %v1646_v24 = vpop.f32.mrb[23].mxu0 }
 0x88a   : > { %v1243_v25 = vsel %vm1241_vm6, %v1236_v20, %v1242_v23 }
 0x88b   : > { %v1244_v26 = vpack.c.bf16 %v1243_v25, %v1243_v25 }
 0x88d   : > { %1656 = vmatmul.mubr.msk.bf16.vlgmr.msra.gmra.mrb[20].mxu1 %vm1284_vm7, %v1244_v26 }
 0x960   : > { %v1322_v27 = vpop.f32.mrb[20].mxu1 }
 0x961   : > { %v1323_v28 = vadd.f32 %v1533_v0, %v1322_v27  ;;  %v1657_v29 = vpop.f32.mrb[21].mxu1 }
 0x962   : > { %v1325_v30 = vpop.f32.mrb[22].mxu1 }
 0x963   : > { %v1658_v31 = vpop.f32.mrb[23].mxu1  ;;  %v1328_v32 = vadd.f32 %v1323_v28, %v1173_v12 }
 0x965   : > { %v1329_v33 = vsel %vm573_vm1, %v1328_v32, 0.0 }
 0x966   : > { %1330 = vadd.xlane.f32.xlu0 %v1329_v33 }
 0x9f3   : > { %v1331_v34 = vpop.xlane.xlu0 %1330 }
 0x9f4   : > { %v1332_v35 = vmul.f32 0.03125, %v1331_v34 }
 0x9f6   : > { %v1333_v36 = vsub.f32 %v1328_v32, %v1332_v35 }
 0x9f8   : > { %v1334_v37 = vmul.f32 %v1333_v36, %v1333_v36 }
 0x9fa   : > { %v1335_v38 = vsel %vm573_vm1, %v1334_v37, 0.0 }
 0x9fb   : > { %1336 = vadd.xlane.f32.xlu0 %v1335_v38 }
 0xa88   : > { %v1337_v39 = vpop.xlane.xlu0 %1336 }
 0xa89   : > { %v1338_v40 = vmul.f32 0.03125, %v1337_v39 }
 0xa8b   : > { %v1339_v41 = vadd.f32 1e-05, %v1338_v40 }
 0xa8d   : > { %1795 = vrsqrt.f32 %v1339_v41 }
 0xa97   : > { %v1796_v42 = vpop.eup %1795 }
 0xa98   : > { %v1341_v44 = vmul.f32 %v1796_v42, %v1333_v36 }
 0xa9a   : > { %v1349_v46 = vmul.f32 %v1539_v43, %v1341_v44 }
 0xa9c   : > { %v1357_v47 = vadd.f32 %v1540_v45, %v1349_v46 }
 0xa9e   : > { %1358 = vst.msk [vmem:[%s536_s21] sm:$0xff] %vm573_vm1, %v1357_v47 }
 0xa9f   : > { %1950 = shalt.err (!%p1947_p1)
}
 0xaa0   : > { %s1951_s14 = scalar_lea.hbm %s2439_s25, 128  ;;  %s1955_s13 = scalar_lea.hbm %s2539_s18, 256 }
 0xaa1   : > { %p1952_p0 = scmp.ne.s32.totalorder %s2439_s25, %s1951_s14  ;;  %p1956_p9 = scmp.lt.u32.totalorder %s2439_s25, %s2539_s18 }
 0xaa2   : > { %p1957_p12 = scmp.lt.u32.totalorder %s1955_s13, %s1951_s14  ;;  %p1959_p2 = scmp.lt.u32.totalorder %s1951_s14, %s2439_s25 }
 0xaa3   : > { %p1953_p6 = pnand %p1952_p0, %p2540_p3 }
 0xaa4   : > { %p1958_p10 = por %p1957_p12, %p1956_p9 }
 0xaa5   : > { %p1954_p5 = pneg %p1953_p6 }
 0xaa6   : > { %p1960_p4 = por %p1959_p2, %p1958_p10 }
 0xaa8   : > { %p1961_p7 = pnand %p1960_p4, %p1954_p5 }
 0xaaa   : > { %1964 = shalt.err (!%p1961_p7)
}
 0xaab   : > { %1679 = dma.vmem_to_hbm [thread:$0]  (%p2540_p3), %s2441_s29, 128, %s2439_s25, %s1360_s20  }
 0xaac PF: > { %s2541_s19 = sld [smem:[#allocation19_spill]]  ;;  %s2542_s16 = sld [smem:[#allocation16_spill]] }
 0xaad   : > { %s2543_s21 = sld [smem:[#allocation23_spill]] }
 0xab2   : > { %p1711_p8 = scmp.ge.s32.totalorder %s2541_s19, 2  ;;  %s1385_s26 = sand.u32 1, %s2542_s16  }
 0xab3   : > { %p2544_p11 = scmp.ne.s32.totalorder %s2543_s21, 0  ;;  %s1386_s27 = scalar_lea.sflag [#allocation4], %s1385_s26 }
 0xab5   : > { %p1698_p13 = pnand %p1711_p8, %p2544_p11 }
 0xab7   : > { %1994 = dma.done.wait (!%p1698_p13), %s1386_s27, 128  }
 0xab8   : > { %1996 = vsyncadd (!%p1698_p13), %s1386_s27, 4294967168  ;;  %s2545_s16 = sld [smem:[#allocation20_spill]]  ;;  %s2546_s29 = sld [smem:[#allocation17_spill]] }
 0xab9   : > { %s2547_s30 = sld [smem:[#allocation18_spill]]  ;;  %s2548_s15 = sld [smem:[#allocation21_spill]] }
 0xabe   : > { %p27_p1 = scmp.ge.s32.totalorder %s2545_s16, 4  }
 0xac0   :  { %29 = sbr.rel (!%p27_p1) target bundleno = 11 (0xb), region = 135 }
 0xac7   :  { %1391 = vsyncpa [#allocation3], 1 }
 0xac8   :  { %1393 = vsyncpa [#allocation3 + $0x1], 1 }
 0xac9   :  { %1394 = vsyncpa [#allocation6], 1 }
 0xaca   :  { %1395 = vsyncpa [#allocation9], 1 }
 0xacb   :  { %1396 = vsyncpa [#allocation4], 1 }
 0xacc   :  { %1398 = vsyncpa [#allocation4 + $0x1], 1 }

</bundles_post_ra>
